<compile_context>
chip_gen: v7x
topology: tpu7x:2x2x1
jax: 0.10.0
libtpu: 0.0.40
codegen_flags: <defaults>
</compile_context>

<pallas_src>
import functools

import jax
import jax.numpy as jnp
from jax.experimental import pallas as pl
from jax.experimental.pallas import tpu as pltpu


_SQRT_2_OVER_PI = 0.7978845608028654


def _gelu_tanh(x):
    return 0.5 * x * (1.0 + jnp.tanh(_SQRT_2_OVER_PI * (x + 0.044715 * x * x * x)))


def _layernorm_cols(x, gamma, beta, eps=1e-5):
    """LayerNorm over the feature axis (axis 0) of a feature-major (N, TB) tile."""
    mu = jnp.mean(x, axis=0, keepdims=True)
    xc = x - mu
    var = jnp.mean(xc * xc, axis=0, keepdims=True)
    inv = jax.lax.rsqrt(var + eps)
    return xc * inv * gamma + beta


# ----------------------------------------------------------------------------
# Kernels (all activations are feature-major: (features, batch_tile))
# ----------------------------------------------------------------------------

def _proj_concat_kernel(xT_ref, w1_ref, b1_ref, o_ref, *, img_size):
    # x = projection_1st(x); x = cat([x, x_orig], -1)   (feature-major)
    xT = xT_ref[...]
    p = jnp.dot(w1_ref[...], xT, preferred_element_type=jnp.float32) + b1_ref[...]
    o_ref[0:img_size, :] = p.astype(o_ref.dtype)
    o_ref[img_size:2 * img_size, :] = xT.astype(o_ref.dtype)


def _block_kernel(xT_ref, xorigT_ref, g1_ref, be1_ref, wqkv_ref, wo_ref, bo_ref,
                  g2_ref, be2_ref, wff1_ref, bff1_ref, wff2_ref, bff2_ref,
                  wproj_ref, bproj_ref, o_ref, *, n_head, head_size, img_size, scale):
    xT = xT_ref[...]                                     # (N, TB) feature-major
    n_embd, tb = xT.shape

    # ---- LayerNorm 1 ----
    h = _layernorm_cols(xT, g1_ref[...], be1_ref[...])

    # ---- fused QKV: ONE MXU dot for all heads: (3N, N) @ (N, TB) ----
    qkvT = jnp.dot(wqkv_ref[...], h, preferred_element_type=jnp.float32)
    qkvT = qkvT.reshape(3, n_head, head_size, tb)
    qh, kh, vh = qkvT[0], qkvT[1], qkvT[2]               # each (n_head, H, TB)

    # ---- per-head attention: batch on lanes (lane-dense), j on sublanes ----
    s = (qh[:, :, None, :] * kh[:, None, :, :]) * scale  # (n_head, Hi, Hj, TB)
    m = jnp.max(s, axis=2, keepdims=True)
    p = jnp.exp(s - m)
    num = jnp.sum(p * vh[:, None, :, :], axis=2)         # (n_head, Hi, TB)
    den = jnp.sum(p, axis=2)                             # (n_head, Hi, TB)
    # dropout (attention + multi-head output) is eval-mode identity.
    attn_out = (num * pl.reciprocal(den, approx=True)).reshape(n_embd, tb)

    # ---- head-concat output projection + residual ----
    y = jnp.dot(wo_ref[...], attn_out, preferred_element_type=jnp.float32) + bo_ref[...]
    x1 = xT + y

    # ---- LayerNorm 2 + FeedForward + residual ----
    h2 = _layernorm_cols(x1, g2_ref[...], be2_ref[...])
    f = jnp.dot(wff1_ref[...], h2, preferred_element_type=jnp.float32) + bff1_ref[...]
    f = _gelu_tanh(f)
    f = jnp.dot(wff2_ref[...], f, preferred_element_type=jnp.float32) + bff2_ref[...]
    x2 = x1 + f

    # ---- per-layer projection back to img_size, concat with x_orig ----
    pr = jnp.dot(wproj_ref[...], x2, preferred_element_type=jnp.float32) + bproj_ref[...]
    o_ref[0:img_size, :] = pr.astype(o_ref.dtype)
    o_ref[img_size:2 * img_size, :] = xorigT_ref[...].astype(o_ref.dtype)


def _final_kernel(xT_ref, gf_ref, bf_ref, wf_ref, bfin_ref, o_ref):
    h = _layernorm_cols(xT_ref[...], gf_ref[...], bf_ref[...])
    logits = jnp.dot(wf_ref[...], h, preferred_element_type=jnp.float32) + bfin_ref[...]
    o_ref[...] = logits.astype(o_ref.dtype)


# ----------------------------------------------------------------------------
# pallas_call wrappers
# ----------------------------------------------------------------------------

def _common_grid(batch):
    tb = batch if batch <= 128 else 128
    return tb, (pl.cdiv(batch, tb),)


def _proj_concat_call(xT, w1, b1):
    img, batch = xT.shape
    tb, grid = _common_grid(batch)
    kernel = functools.partial(_proj_concat_kernel, img_size=img)
    return pl.pallas_call(
        kernel,
        out_shape=jax.ShapeDtypeStruct((2 * img, batch), xT.dtype),
        grid_spec=pltpu.PrefetchScalarGridSpec(
            num_scalar_prefetch=0,
            grid=grid,
            in_specs=[
                pl.BlockSpec((img, tb), lambda i: (0, i)),
                pl.BlockSpec((img, img), lambda i: (0, 0)),
                pl.BlockSpec((img, 1), lambda i: (0, 0)),
            ],
            out_specs=pl.BlockSpec((2 * img, tb), lambda i: (0, i)),
        ),
        compiler_params=pltpu.CompilerParams(dimension_semantics=("parallel",)),
    )(xT, w1, b1)


def _block_call(xT, xorigT, layer, n_head):
    n_embd, batch = xT.shape
    img = xorigT.shape[0]
    head_size = n_embd // n_head
    tb, grid = _common_grid(batch)
    scale = float(n_embd) ** -0.5
    kernel = functools.partial(_block_kernel, n_head=n_head, head_size=head_size,
                               img_size=img, scale=scale)

    def wspec(shape):
        return pl.BlockSpec(shape, lambda i: (0, 0))      # weights stay resident

    return pl.pallas_call(
        kernel,
        out_shape=jax.ShapeDtypeStruct((n_embd, batch), xT.dtype),
        grid_spec=pltpu.PrefetchScalarGridSpec(
            num_scalar_prefetch=0,
            grid=grid,
            in_specs=[
                pl.BlockSpec((n_embd, tb), lambda i: (0, i)),   # x (feature-major)
                pl.BlockSpec((img, tb), lambda i: (0, i)),      # x_orig
                wspec((n_embd, 1)), wspec((n_embd, 1)),          # ln1 gamma/beta
                wspec((3 * n_embd, n_embd)),                     # fused QKV weight
                wspec((n_embd, n_embd)), wspec((n_embd, 1)),     # out-proj W, b
                wspec((n_embd, 1)), wspec((n_embd, 1)),          # ln2 gamma/beta
                wspec((4 * n_embd, n_embd)), wspec((4 * n_embd, 1)),  # ff1 W, b
                wspec((n_embd, 4 * n_embd)), wspec((n_embd, 1)),      # ff2 W, b
                wspec((img, n_embd)), wspec((img, 1)),           # per-layer proj W, b
            ],
            out_specs=pl.BlockSpec((n_embd, tb), lambda i: (0, i)),
        ),
        compiler_params=pltpu.CompilerParams(dimension_semantics=("parallel",)),
    )(xT, xorigT, layer["g1"], layer["be1"], layer["wqkv"], layer["wo"], layer["bo"],
      layer["g2"], layer["be2"], layer["wff1"], layer["bff1"], layer["wff2"],
      layer["bff2"], layer["wproj"], layer["bproj"])


def _final_call(xT, gf, bf, wf, bfin):
    n_embd, batch = xT.shape
    n_classes = wf.shape[0]
    tb, grid = _common_grid(batch)
    return pl.pallas_call(
        _final_kernel,
        out_shape=jax.ShapeDtypeStruct((n_classes, batch), xT.dtype),
        grid_spec=pltpu.PrefetchScalarGridSpec(
            num_scalar_prefetch=0,
            grid=grid,
            in_specs=[
                pl.BlockSpec((n_embd, tb), lambda i: (0, i)),
                pl.BlockSpec((n_embd, 1), lambda i: (0, 0)),
                pl.BlockSpec((n_embd, 1), lambda i: (0, 0)),
                pl.BlockSpec((n_classes, n_embd), lambda i: (0, 0)),
                pl.BlockSpec((n_classes, 1), lambda i: (0, 0)),
            ],
            out_specs=pl.BlockSpec((n_classes, tb), lambda i: (0, i)),
        ),
        compiler_params=pltpu.CompilerParams(dimension_semantics=("parallel",)),
    )(xT, gf, bf, wf, bfin)


def transformer_forward(x, params, n_head):
    """x: (B, img_size) f32 -> logits (B, n_classes). Eval mode (y=None path)."""
    xT = x.T                       # one wrapper-side transpose to feature-major layout
    h = _proj_concat_call(xT, params["w1"], params["b1"])
    for layer in params["layers"]:
        h = _block_call(h, xT, layer, n_head)
    logitsT = _final_call(h, params["gf"], params["bf"], params["wf"], params["bfin"])
    return logitsT.T


# ----------------------------------------------------------------------------
# Pure-JAX reference (batch-major, mirrors the torch module; same tanh-GELU)
# ----------------------------------------------------------------------------

def transformer_reference(x, params, n_head):
    def ln(z, g, b, eps=1e-5):
        mu = jnp.mean(z, axis=-1, keepdims=True)
        zc = z - mu
        var = jnp.mean(zc * zc, axis=-1, keepdims=True)
        return zc / jnp.sqrt(var + eps) * g + b

    x_orig = x
    h = x @ params["w1"].T + params["b1"][:, 0]
    h = jnp.concatenate([h, x_orig], axis=-1)
    for L in params["layers"]:
        _, n_embd = h.shape
        head_size = n_embd // n_head
        scale = float(n_embd) ** -0.5
        a = ln(h, L["g1"][:, 0], L["be1"][:, 0])
        qkv = a @ L["wqkv"].T
        q, k, v = qkv[:, :n_embd], qkv[:, n_embd:2 * n_embd], qkv[:, 2 * n_embd:]
        heads = []
        for hh in range(n_head):
            sl = slice(hh * head_size, (hh + 1) * head_size)
            attn = jnp.einsum("bi,bj->bij", q[:, sl], k[:, sl]) * scale
            attn = jax.nn.softmax(attn, axis=-1)
            heads.append(jnp.einsum("bij,bj->bi", attn, v[:, sl]))
        mh = jnp.concatenate(heads, axis=-1)
        h = h + (mh @ L["wo"].T + L["bo"][:, 0])
        a2 = ln(h, L["g2"][:, 0], L["be2"][:, 0])
        f = _gelu_tanh(a2 @ L["wff1"].T + L["bff1"][:, 0])
        f = f @ L["wff2"].T + L["bff2"][:, 0]
        h = h + f
        pr = h @ L["wproj"].T + L["bproj"][:, 0]
        h = jnp.concatenate([pr, x_orig], axis=-1)
    a = ln(h, params["gf"][:, 0], params["bf"][:, 0])
    return a @ params["wf"].T + params["bfin"][:, 0]


# ----------------------------------------------------------------------------
# Deterministic parameter construction + self-test
# ----------------------------------------------------------------------------

def make_params(key, img_size, n_head, n_layers, n_classes):
    n_embd = 2 * img_size
    keys = iter(jax.random.split(key, 8 + 16 * n_layers))

    def nrm(shape, scale):
        return jax.random.normal(next(keys), shape, dtype=jnp.float32) * scale

    params = {
        "w1": nrm((img_size, img_size), img_size ** -0.5),
        "b1": nrm((img_size, 1), 0.02),
        "gf": 1.0 + nrm((n_embd, 1), 0.02),
        "bf": nrm((n_embd, 1), 0.02),
        "wf": nrm((n_classes, n_embd), n_embd ** -0.5),
        "bfin": nrm((n_classes, 1), 0.02),
        "layers": [],
    }
    for _ in range(n_layers):
        params["layers"].append({
            "g1": 1.0 + nrm((n_embd, 1), 0.02),
            "be1": nrm((n_embd, 1), 0.02),
            "wqkv": nrm((3 * n_embd, n_embd), n_embd ** -0.5),
            "wo": nrm((n_embd, n_embd), n_embd ** -0.5),
            "bo": nrm((n_embd, 1), 0.02),
            "g2": 1.0 + nrm((n_embd, 1), 0.02),
            "be2": nrm((n_embd, 1), 0.02),
            "wff1": nrm((4 * n_embd, n_embd), n_embd ** -0.5),
            "bff1": nrm((4 * n_embd, 1), 0.02),
            "wff2": nrm((n_embd, 4 * n_embd), (4 * n_embd) ** -0.5),
            "bff2": nrm((n_embd, 1), 0.02),
            "wproj": nrm((img_size, n_embd), n_embd ** -0.5),
            "bproj": nrm((img_size, 1), 0.02),
        })
    return params


if __name__ == "__main__":
    # Small shapes consistent with the module structure (n_embd = 2*img_size,
    # head_size = n_embd // n_head), scaled down from 784/1568/16-head/16-layer.
    B = 4
    img_size = 32
    n_head = 4
    n_layers = 2
    n_classes = 10

    key = jax.random.PRNGKey(0)
    kx, kp = jax.random.split(key)
    x = jax.random.normal(kx, (B, img_size), dtype=jnp.float32)
    params = make_params(kp, img_size, n_head, n_layers, n_classes)

    logits = transformer_forward(x, params, n_head)
    logits = jax.block_until_ready(logits)

    ref = transformer_reference(x, params, n_head)
    assert logits.shape == (B, n_classes)
    err = float(jnp.max(jnp.abs(logits - ref)))
    assert jnp.allclose(logits, ref, atol=5e-3, rtol=5e-3), (
        "mismatch vs reference: max abs err = %g" % err)

    print("KERNEL_OK")
</pallas_src>

<mosaic_0001>
module attributes {stable_mosaic.version = 11 : i64} {
  func.func @_proj_concat_kernel(%arg0: i32, %arg1: memref<32x4xf32, #tpu.memory_space<vmem>>, %arg2: memref<32x32xf32, #tpu.memory_space<vmem>>, %arg3: memref<32x1xf32, #tpu.memory_space<vmem>>, %arg4: memref<64x4xf32, #tpu.memory_space<vmem>>) attributes {dimension_semantics = [#tpu.dimension_semantics<parallel>], iteration_bounds = array<i64: 1>, scalar_prefetch = 0 : i64, scratch_operands = 0 : i64, tpu.core_type = #tpu.core_type<tc>, window_params = [{transform_indices = @transform_0, window_bounds = array<i64: 32, 4>}, {pipeline_mode = #tpu.pipeline_mode<synchronous>, transform_indices = @transform_1, window_bounds = array<i64: 32, 32>}, {pipeline_mode = #tpu.pipeline_mode<synchronous>, transform_indices = @transform_2, window_bounds = array<i64: 32, 1>}, {transform_indices = @transform_3, window_bounds = array<i64: 64, 4>}]} {
    %c0 = arith.constant 0 : index
    %c0_0 = arith.constant 0 : index
    %0 = vector.load %arg1[%c0, %c0_0] : memref<32x4xf32, #tpu.memory_space<vmem>>, vector<32x4xf32>
    %c0_1 = arith.constant 0 : index
    %c0_2 = arith.constant 0 : index
    %1 = vector.load %arg2[%c0_1, %c0_2] : memref<32x32xf32, #tpu.memory_space<vmem>>, vector<32x32xf32>
    %cst = arith.constant dense<0.000000e+00> : vector<32x4xf32>
    %2 = tpu.matmul %1, %0, %cst {dimension_numbers = #tpu.dot_dimension_numbers<[1], [0], [0], [1], [0, 0, 1, 1], [], []>} : vector<32x32xf32>, vector<32x4xf32>, vector<32x4xf32> -> vector<32x4xf32>
    %c0_3 = arith.constant 0 : index
    %c0_4 = arith.constant 0 : index
    %3 = vector.load %arg3[%c0_3, %c0_4] : memref<32x1xf32, #tpu.memory_space<vmem>>, vector<32x1xf32>
    %4 = vector.broadcast %3 : vector<32x1xf32> to vector<32x4xf32>
    %5 = arith.addf %2, %4 : vector<32x4xf32>
    %c0_5 = arith.constant 0 : index
    %c0_6 = arith.constant 0 : index
    %6 = vector.load %arg4[%c0_5, %c0_6] : memref<64x4xf32, #tpu.memory_space<vmem>>, vector<32x4xf32>
    tpu.vector_store %arg4[%c0_5, %c0_6], %5 {strides = array<i32>} : memref<64x4xf32, #tpu.memory_space<vmem>>, vector<32x4xf32>,
    %c32 = arith.constant 32 : index
    %c0_7 = arith.constant 0 : index
    %7 = vector.load %arg4[%c32, %c0_7] : memref<64x4xf32, #tpu.memory_space<vmem>>, vector<32x4xf32>
    tpu.vector_store %arg4[%c32, %c0_7], %0 {strides = array<i32>} : memref<64x4xf32, #tpu.memory_space<vmem>>, vector<32x4xf32>,
    return
  }
  func.func @transform_0(%arg0: i32) -> (i32, i32) {
    %c0_i32 = arith.constant 0 : i32
    %c0_i32_0 = arith.constant 0 : i32
    return %c0_i32, %arg0 : i32, i32
  }
  func.func @transform_1(%arg0: i32) -> (i32, i32) {
    %c0_i32 = arith.constant 0 : i32
    %c0_i32_0 = arith.constant 0 : i32
    %c0_i32_1 = arith.constant 0 : i32
    return %c0_i32, %c0_i32_0 : i32, i32
  }
  func.func @transform_2(%arg0: i32) -> (i32, i32) {
    %c0_i32 = arith.constant 0 : i32
    %c0_i32_0 = arith.constant 0 : i32
    %c0_i32_1 = arith.constant 0 : i32
    return %c0_i32, %c0_i32_0 : i32, i32
  }
  func.func @transform_3(%arg0: i32) -> (i32, i32) {
    %c0_i32 = arith.constant 0 : i32
    %c0_i32_0 = arith.constant 0 : i32
    return %c0_i32, %arg0 : i32, i32
  }
}

</mosaic_0001>

<bundles_post_ra>
// kernel: tpu_custom_call.1
= control target key start
LH: loop header
LB: loop body
LE: loop exit
PB: predicated region body
PF: predicated region fallthrough
CT: control target
= control target key end

     0   :  { %vm144_vm0 = vcmask 31744   ;;  %vm46_vm1 = vcmask 261120   ;;  %v198_v3 = vmov 0   ;;  %s291_s0 = inlined_call_operand.vmem [shape: f32[32,4], index: 0, kind: input, shape index: {}]   ;;  %s292_s3 = inlined_call_operand.vmem [shape: f32[64,4], index: 3, kind: output, shape index: {}]   ;;  %s293_s1 = inlined_call_operand.vmem [shape: f32[32,32], index: 1, kind: input, shape index: {}]   ;;  %s294_s2 = inlined_call_operand.vmem [shape: f32[32,1], index: 2, kind: input, shape index: {}]  }
   0x1   :  { %v14_v0 = vld [vmem:[%s291_s0] sm:$0xff]  ;;  %v15_v1 = vld [vmem:[%s291_s0 + $0x8] sm:$0xff]  ;;  %v16_v2 = vld [vmem:[%s291_s0 + $0x10] sm:$0xff]  ;;  %197 = vset.pattern.permute.xlu1 %v198_v3  ;;  %196 = vset.pattern.permute.xlu0 %v198_v3 }
   0x2   :  { %v183_v4 = vpack.c.bf16 %v15_v1, %v14_v0  ;;  %149 = vst.msk [vmem:[%s292_s3 + $0x20] sm:$0xff] %vm144_vm0, %v14_v0  ;;  %150 = vst.msk [vmem:[%s292_s3 + $0x28] sm:$0xff] %vm144_vm0, %v15_v1  ;;  %v17_v5 = vld [vmem:[%s291_s0 + $0x18] sm:$0xff]  ;;  %v18_v6 = vld [vmem:[%s293_s1] sm:$0xff] }
   0x3   :  { %151 = vst.msk [vmem:[%s292_s3 + $0x30] sm:$0xff] %vm144_vm0, %v16_v2  ;;  %v20_v7 = vld [vmem:[%s293_s1 + $0x10] sm:$0xff]  ;;  %v187_v8 = vpack.c.bf16 %v17_v5, %v16_v2  ;;  %152 = vst.msk [vmem:[%s292_s3 + $0x38] sm:$0xff] %vm144_vm0, %v17_v5  ;;  %177 = vmatprep.mubr.msk.f32.mxu0 %vm46_vm1, %v18_v6  ;;  %v22_v10 = vld [vmem:[%s294_s2] sm:$0xff] }
   0x4   :  { %180 = vmatprep.mubr.msk.f32.mxu1 %vm46_vm1, %v20_v7  ;;  %184 = vmatprep.subr.bf16.mxu0 %v183_v4  ;;  %v24_v9 = vld [vmem:[%s294_s2 + $0x10] sm:$0xff]  ;;  %v25_v11 = vld [vmem:[%s294_s2 + $0x18] sm:$0xff]  ;;  %v23_v12 = vld [vmem:[%s294_s2 + $0x8] sm:$0xff] }
   0x5   :  { %191 = vmatprep.subr.bf16.mxu1 %v183_v4  ;;  %186 = vmatpush3.bf16.msra.mxu0 %v183_v4  ;;  %v19_v13 = vld [vmem:[%s293_s1 + $0x8] sm:$0xff]  ;;  %v21_v14 = vld [vmem:[%s293_s1 + $0x18] sm:$0xff] }
   0x6   :  { %193 = vmatpush3.bf16.msra.mxu1 %v183_v4  ;;  %188 = vmatprep.subr.bf16.mxu0 %v187_v8 }
   0x7   :  { %192 = vmatprep.subr.bf16.mxu1 %v187_v8  ;;  %38 = vperm.xlu1 %197, %v24_v9  }
   0x8   :  { %28 = vperm.xlu0 %196, %v22_v10  }
   0x9   :  { %190 = vmatpush3.bf16.msra.mxu0 %v187_v8 }
   0xa   :  { %194 = vmatpush3.bf16.msra.mxu1 %v187_v8 }
   0xb   :  { %43 = vperm.xlu1 %197, %v25_v11  }
   0xc   :  { %33 = vperm.xlu0 %196, %v23_v12   ;;  %178 = vmatmul.mubr.msk.f32.vlgmr.msra.gmra.mrb[0].mxu0 %vm46_vm1, %v19_v13 }
   0xd   :  { %181 = vmatmul.mubr.msk.f32.vlgmr.msra.gmra.mrb[0].mxu1 %vm46_vm1, %v21_v14 }
  0x86   :  { %v39_v15 = vpop.permute.xlu1 %38 }
  0x87   :  { %v29_v16 = vpop.permute.xlu0 %28 }
  0x8a   :  { %v44_v17 = vpop.permute.xlu1 %43 }
  0x8b   :  { %v34_v18 = vpop.permute.xlu0 %33 }
  0xdf   :  { %v179_v19 = vpop.f32.mrb[0].mxu0 }
  0xe0   :  { %v182_v20 = vpop.f32.mrb[0].mxu1  ;;  %v131_v21 = vadd.f32 %v179_v19, %v34_v18  ;;  %v125_v23 = vpop.f32.mrb[1].mxu0 }
  0xe1   :  { %v141_v22 = vadd.f32 %v182_v20, %v44_v17  ;;  %v135_v24 = vpop.f32.mrb[1].mxu1  ;;  %v126_v25 = vadd.f32 %v125_v23, %v29_v16 }
  0xe2   :  { %v136_v26 = vadd.f32 %v135_v24, %v39_v15  ;;  %146 = vst.msk [vmem:[%s292_s3 + $0x8] sm:$0xff] %vm144_vm0, %v131_v21 }
  0xe3   :  { %148 = vst.msk [vmem:[%s292_s3 + $0x18] sm:$0xff] %vm144_vm0, %v141_v22  ;;  %145 = vst.msk [vmem:[%s292_s3] sm:$0xff] %vm144_vm0, %v126_v25 }
  0xe4   :  { %147 = vst.msk [vmem:[%s292_s3 + $0x10] sm:$0xff] %vm144_vm0, %v136_v26 }

</bundles_post_ra>
